<compile_context>
chip_gen: v7x
topology: tpu7x:2x2x1
jax: 0.10.0
libtpu: 0.0.40
codegen_flags: <defaults>
</compile_context>

<pallas_src>
import functools
import math

import jax
import jax.numpy as jnp
from jax.experimental import pallas as pl
from jax.experimental.pallas import tpu as pltpu


# ---------------------------------------------------------------------------
# helpers
# ---------------------------------------------------------------------------
def _round_up(x, m):
    return (x + m - 1) // m * m


def _pad2d(a, rows, cols):
    R, C = a.shape
    if R == rows and C == cols:
        return a
    return jnp.zeros((rows, cols), a.dtype).at[:R, :C].set(a)


# ---------------------------------------------------------------------------
# Pallas kernel: tiled matmul (weight kept in (N, K) layout) + bias epilogue
# ---------------------------------------------------------------------------
def _proj_kernel(x_ref, w_ref, b_ref, o_ref, acc_ref):
    # x_ref: (tm, tk)   patch tile
    # w_ref: (tn, tk)   weight tile, nn.Linear layout (out, in)
    # b_ref: (1, tn)    bias tile
    # o_ref: (tm, tn)   output tile
    # acc_ref: (tm, tn) f32 accumulator, resident across the K grid axis
    k = pl.program_id(2)

    @pl.when(k == 0)
    def _():
        acc_ref[...] = jnp.zeros_like(acc_ref)

    acc_ref[...] += jax.lax.dot_general(
        x_ref[...], w_ref[...],
        dimension_numbers=(((1,), (1,)), ((), ())),
        preferred_element_type=jnp.float32)

    @pl.when(k == pl.num_programs(2) - 1)
    def _():
        o_ref[...] = (acc_ref[...] + b_ref[...]).astype(o_ref.dtype)


def _patch_proj(patches_flat, weight_nk, bias_n,
                tm_pref=512, tn_pref=256, tk_pref=256):
    """patches_flat: (M, K) f32, weight_nk: (N, K) f32, bias_n: (N,) f32."""
    M, K = patches_flat.shape
    N, Kw = weight_nk.shape
    assert Kw == K

    # ---- lane-aligned, tile-divisible padded dims -------------------------
    tm = min(tm_pref, _round_up(M, 8))          # sublane-aligned M tile
    Mp = _round_up(M, tm)
    Kp128 = _round_up(K, 128)                   # lane-aligned K
    tk = tk_pref if Kp128 % tk_pref == 0 else 128
    Kp = _round_up(K, tk)
    Np128 = _round_up(N, 128)                   # lane-dense output N
    tn = tn_pref if Np128 % tn_pref == 0 else 128
    Np = _round_up(N, tn)

    x_p = _pad2d(patches_flat, Mp, Kp)
    w_p = _pad2d(weight_nk, Np, Kp)
    b_p = _pad2d(bias_n.reshape(1, N), 1, Np)

    grid = (Mp // tm, Np // tn, Kp // tk)

    out = pl.pallas_call(
        _proj_kernel,
        out_shape=jax.ShapeDtypeStruct((Mp, Np), jnp.float32),
        grid_spec=pltpu.PrefetchScalarGridSpec(
            num_scalar_prefetch=0,
            grid=grid,
            in_specs=[
                pl.BlockSpec((tm, tk), lambda i, j, k: (i, k)),
                pl.BlockSpec((tn, tk), lambda i, j, k: (j, k)),
                pl.BlockSpec((1, tn), lambda i, j, k: (0, j)),
            ],
            out_specs=pl.BlockSpec((tm, tn), lambda i, j, k: (i, j)),
            scratch_shapes=[pltpu.VMEM((tm, tn), jnp.float32)],
        ),
        compiler_params=pltpu.CompilerParams(
            dimension_semantics=("parallel", "parallel", "arbitrary"),
            vmem_limit_bytes=32 * 1024 * 1024,   # fits v5e/v6e/v7x scoped VMEM
        ),
        cost_estimate=pl.CostEstimate(
            flops=2 * Mp * Kp * Np,
            transcendentals=0,
            bytes_accessed=4 * (Mp * Kp + Kp * Np + Mp * Np),
        ),
    )(x_p, w_p, b_p)

    return out[:M, :N]


# ---------------------------------------------------------------------------
# PatchEmbed forward (matches the PyTorch module semantics exactly)
# ---------------------------------------------------------------------------
@functools.partial(jax.jit, static_argnames=("patch_size",))
def patch_embed_forward(x, weight, bias, patch_size):
    """
    x:      (B, C, H, W)  NCHW, float32
    weight: (embed_dim, C*patch_size*patch_size)  -- nn.Linear weight layout
    bias:   (embed_dim,)
    returns (B, num_patches, embed_dim)
    """
    B, C, H, W = x.shape
    p = patch_size
    nH, nW = H // p, W // p
    num_patches = nH * nW
    K = C * p * p

    # Single collapsed patchify:
    # (B,C,H,W) -> (B,C,nH,p,nW,p) -> (B,nH,nW,C,p,p) -> (B*num_patches, C*p*p)
    patches_flat = (x.reshape(B, C, nH, p, nW, p)
                     .transpose(0, 2, 4, 1, 3, 5)
                     .reshape(B * num_patches, K))

    out = _patch_proj(patches_flat, weight, bias)  # (M, embed_dim)
    return out.reshape(B, num_patches, weight.shape[0])


# ---------------------------------------------------------------------------
# Main
# ---------------------------------------------------------------------------
if __name__ == "__main__":
    img_size = 28
    patch_size = 7
    embed_dim = 64
    in_chans = 1
    B = 2

    patch_dim = patch_size * patch_size * in_chans  # 49
    num_patches = (img_size // patch_size) ** 2     # 16

    key = jax.random.PRNGKey(0)
    kx, kw, kb = jax.random.split(key, 3)

    # Deterministic nn.Linear-style init: U(-1/sqrt(in), 1/sqrt(in)).
    bound = 1.0 / math.sqrt(patch_dim)
    weight = jax.random.uniform(
        kw, (embed_dim, patch_dim), dtype=jnp.float32, minval=-bound, maxval=bound)
    bias = jax.random.uniform(
        kb, (embed_dim,), dtype=jnp.float32, minval=-bound, maxval=bound)

    x = jax.random.normal(kx, (B, in_chans, img_size, img_size), dtype=jnp.float32)

    out = patch_embed_forward(x, weight, bias, patch_size)
    out = jax.block_until_ready(out)

    assert out.shape == (B, num_patches, embed_dim), out.shape

    # Pure-JAX reference following the original PyTorch unfold/permute path.
    p = patch_size
    nH = img_size // p
    ref_patches = (x.reshape(B, in_chans, nH, p, nH, p)
                    .transpose(0, 1, 2, 4, 3, 5)
                    .reshape(B, in_chans, num_patches, p, p)
                    .transpose(0, 2, 1, 3, 4)
                    .reshape(B, num_patches, patch_dim))
    ref = ref_patches @ weight.T + bias
    assert jnp.allclose(out, ref, atol=1e-5, rtol=1e-5), float(
        jnp.max(jnp.abs(out - ref)))

    print("KERNEL_OK")
</pallas_src>

<mosaic_0001>
module attributes {stable_mosaic.version = 11 : i64} {
  func.func @_proj_kernel(%arg0: i32, %arg1: i32, %arg2: i32, %arg3: memref<32x128xf32, #tpu.memory_space<vmem>>, %arg4: memref<128x128xf32, #tpu.memory_space<vmem>>, %arg5: memref<1x128xf32, #tpu.memory_space<vmem>>, %arg6: memref<32x128xf32, #tpu.memory_space<vmem>>, %arg7: memref<32x128xf32, #tpu.memory_space<vmem>>) attributes {dimension_semantics = [#tpu.dimension_semantics<parallel>, #tpu.dimension_semantics<parallel>, #tpu.dimension_semantics<arbitrary>], iteration_bounds = array<i64: 1, 1, 1>, scalar_prefetch = 0 : i64, scratch_operands = 1 : i64, tpu.core_type = #tpu.core_type<tc>, window_params = [{transform_indices = @transform_0, window_bounds = array<i64: 32, 128>}, {transform_indices = @transform_1, window_bounds = array<i64: 128, 128>}, {transform_indices = @transform_2, window_bounds = array<i64: 1, 128>}, {transform_indices = @transform_3, window_bounds = array<i64: 32, 128>}]} {
    %c0_i32 = arith.constant 0 : i32
    %0 = arith.cmpi eq, %arg2, %c0_i32 : i32
    %1 = arith.extui %0 : i1 to i32
    %c0_i32_0 = arith.constant 0 : i32
    %2 = arith.cmpi ne, %1, %c0_i32_0 : i32
    scf.if %2 {
      %cst_10 = arith.constant 0.000000e+00 : f32
      %12 = vector.broadcast %cst_10 : f32 to vector<32x128xf32>
      %c0_11 = arith.constant 0 : index
      %c0_12 = arith.constant 0 : index
      %13 = vector.load %arg7[%c0_11, %c0_12] : memref<32x128xf32, #tpu.memory_space<vmem>>, vector<32x128xf32>
      tpu.vector_store %arg7[%c0_11, %c0_12], %12 {strides = array<i32>} : memref<32x128xf32, #tpu.memory_space<vmem>>, vector<32x128xf32>,
    } else {
    }
    %c0 = arith.constant 0 : index
    %c0_1 = arith.constant 0 : index
    %3 = vector.load %arg7[%c0, %c0_1] : memref<32x128xf32, #tpu.memory_space<vmem>>, vector<32x128xf32>
    %c0_2 = arith.constant 0 : index
    %c0_3 = arith.constant 0 : index
    %4 = vector.load %arg3[%c0_2, %c0_3] : memref<32x128xf32, #tpu.memory_space<vmem>>, vector<32x128xf32>
    %c0_4 = arith.constant 0 : index
    %c0_5 = arith.constant 0 : index
    %5 = vector.load %arg4[%c0_4, %c0_5] : memref<128x128xf32, #tpu.memory_space<vmem>>, vector<128x128xf32>
    %cst = arith.constant dense<0.000000e+00> : vector<32x128xf32>
    %6 = tpu.matmul %4, %5, %cst {dimension_numbers = #tpu.dot_dimension_numbers<[1], [1], [0], [0], [0, 0, 1, 0], [], []>} : vector<32x128xf32>, vector<128x128xf32>, vector<32x128xf32> -> vector<32x128xf32>
    %7 = arith.addf %3, %6 : vector<32x128xf32>
    %c0_6 = arith.constant 0 : index
    %c0_7 = arith.constant 0 : index
    %8 = vector.load %arg7[%c0_6, %c0_7] : memref<32x128xf32, #tpu.memory_space<vmem>>, vector<32x128xf32>
    tpu.vector_store %arg7[%c0_6, %c0_7], %7 {strides = array<i32>} : memref<32x128xf32, #tpu.memory_space<vmem>>, vector<32x128xf32>,
    %c0_i32_8 = arith.constant 0 : i32
    %9 = arith.cmpi eq, %arg2, %c0_i32_8 : i32
    %10 = arith.extui %9 : i1 to i32
    %c0_i32_9 = arith.constant 0 : i32
    %11 = arith.cmpi ne, %10, %c0_i32_9 : i32
    scf.if %11 {
      %c0_10 = arith.constant 0 : index
      %c0_11 = arith.constant 0 : index
      %12 = vector.load %arg7[%c0_10, %c0_11] : memref<32x128xf32, #tpu.memory_space<vmem>>, vector<32x128xf32>
      %c0_12 = arith.constant 0 : index
      %c0_13 = arith.constant 0 : index
      %13 = vector.load %arg5[%c0_12, %c0_13] : memref<1x128xf32, #tpu.memory_space<vmem>>, vector<1x128xf32>
      %14 = vector.broadcast %13 : vector<1x128xf32> to vector<32x128xf32>
      %15 = arith.addf %12, %14 : vector<32x128xf32>
      %c0_14 = arith.constant 0 : index
      %c0_15 = arith.constant 0 : index
      %16 = vector.load %arg6[%c0_14, %c0_15] : memref<32x128xf32, #tpu.memory_space<vmem>>, vector<32x128xf32>
      tpu.vector_store %arg6[%c0_14, %c0_15], %15 {strides = array<i32>} : memref<32x128xf32, #tpu.memory_space<vmem>>, vector<32x128xf32>,
    } else {
    }
    return
  }
  func.func @transform_0(%arg0: i32, %arg1: i32, %arg2: i32) -> (i32, i32) {
    %c0_i32 = arith.constant 0 : i32
    return %arg0, %arg2 : i32, i32
  }
  func.func @transform_1(%arg0: i32, %arg1: i32, %arg2: i32) -> (i32, i32) {
    %c0_i32 = arith.constant 0 : i32
    return %arg1, %arg2 : i32, i32
  }
  func.func @transform_2(%arg0: i32, %arg1: i32, %arg2: i32) -> (i32, i32) {
    %c0_i32 = arith.constant 0 : i32
    %c0_i32_0 = arith.constant 0 : i32
    return %c0_i32, %arg1 : i32, i32
  }
  func.func @transform_3(%arg0: i32, %arg1: i32, %arg2: i32) -> (i32, i32) {
    %c0_i32 = arith.constant 0 : i32
    return %arg0, %arg1 : i32, i32
  }
}

</mosaic_0001>

<bundles_post_ra>
// kernel: patch_embed_forward.1
= control target key start
LH: loop header
LB: loop body
LE: loop exit
PB: predicated region body
PF: predicated region fallthrough
CT: control target
= control target key end

     0   :  { %s410_s0 = inlined_call_operand.vmem [shape: f32[32,128], index: 0, kind: input, shape index: {}]   ;;  %s411_s1 = inlined_call_operand.vmem [shape: f32[128,128], index: 1, kind: input, shape index: {}]   ;;  %s412_s2 = inlined_call_operand.vmem [shape: f32[1,128], index: 2, kind: input, shape index: {}]   ;;  %s413_s3 = inlined_call_operand.hbm [shape: f32[32,128], index: 3, kind: output, shape index: {}]  }
   0x1   :  { %v31_v0 = vld [vmem:[%s411_s1] sm:$0xff]  ;;  %v32_v1 = vld [vmem:[%s411_s1 + $0x8] sm:$0xff]  ;;  %v33_v2 = vld [vmem:[%s411_s1 + $0x10] sm:$0xff] }
   0x2   :  { %v237_v3 = vpack.c.bf16 %v32_v1, %v31_v0  ;;  %v34_v4 = vld [vmem:[%s411_s1 + $0x18] sm:$0xff]  ;;  %v27_v6 = vld [vmem:[%s410_s0] sm:$0xff]  ;;  %v29_v7 = vld [vmem:[%s410_s0 + $0x10] sm:$0xff] }
   0x3   :  { %v241_v5 = vpack.c.bf16 %v34_v4, %v33_v2  ;;  %v35_v8 = vld [vmem:[%s411_s1 + $0x20] sm:$0xff]  ;;  %v36_v9 = vld [vmem:[%s411_s1 + $0x28] sm:$0xff]  ;;  %231 = vmatprep.mubr.f32.mxu0 %v27_v6  ;;  %234 = vmatprep.mubr.f32.mxu1 %v29_v7 }
   0x4   :  { %238 = vmatprep.subr.bf16.mxu0 %v237_v3  ;;  %269 = vmatprep.subr.bf16.mxu1 %v237_v3 }
   0x5   :  { %240 = vmatpush3.bf16.xpose.msra.mxu0 %v237_v3  ;;  %277 = vmatpush3.bf16.xpose.msra.mxu1 %v237_v3 }
   0x6   :  { %242 = vmatprep.subr.bf16.mxu0 %v241_v5  ;;  %270 = vmatprep.subr.bf16.mxu1 %v241_v5 }
   0x7   :  { %8 = vsyncpa [#allocation4], 0  ;;  %v245_v10 = vpack.c.bf16 %v36_v9, %v35_v8  ;;  %v37_v11 = vld [vmem:[%s411_s1 + $0x30] sm:$0xff]  ;;  %v38_v12 = vld [vmem:[%s411_s1 + $0x38] sm:$0xff] }
   0x8   :  { %v249_v13 = vpack.c.bf16 %v38_v12, %v37_v11  ;;  %v39_v14 = vld [vmem:[%s411_s1 + $0x40] sm:$0xff]  ;;  %v40_v15 = vld [vmem:[%s411_s1 + $0x48] sm:$0xff]  ;;  %v41_v17 = vld [vmem:[%s411_s1 + $0x50] sm:$0xff] }
   0x9   :  { %v253_v16 = vpack.c.bf16 %v40_v15, %v39_v14  ;;  %v42_v18 = vld [vmem:[%s411_s1 + $0x58] sm:$0xff]  ;;  %v43_v20 = vld [vmem:[%s411_s1 + $0x60] sm:$0xff]  ;;  %v44_v21 = vld [vmem:[%s411_s1 + $0x68] sm:$0xff] }
   0xa   :  { %v257_v19 = vpack.c.bf16 %v42_v18, %v41_v17  ;;  %v261_v22 = vpack.c.bf16 %v44_v21, %v43_v20  ;;  %v45_v23 = vld [vmem:[%s411_s1 + $0x70] sm:$0xff]  ;;  %v46_v24 = vld [vmem:[%s411_s1 + $0x78] sm:$0xff]  ;;  %v28_v26 = vld [vmem:[%s410_s0 + $0x8] sm:$0xff]  ;;  %s312_s1 = smov [#allocation3]  }
   0xb   :  { %v265_v25 = vpack.c.bf16 %v46_v24, %v45_v23  ;;  %v30_v27 = vld [vmem:[%s410_s0 + $0x18] sm:$0xff]  ;;  %v178_v28 = vld [vmem:[%s412_s2] ss:$0 sm:$0xff]  ;;  %s167_s27 = sshll.u32 %s312_s1, 4  ;;  %s168_s27 = int_to_ptr.vmem [resolvable:$true] %s167_s27 }
   0xc   :  { %s288_s0 = scalar_lea.vmem %s168_s27, 512  ;;  %p293_p1 = scmp.lt.s32.totalorder %s168_s27, %s168_s27 }
   0xd   :  { %244 = vmatpush3.bf16.xpose.msra.mxu0 %v241_v5  ;;  %278 = vmatpush3.bf16.xpose.msra.mxu1 %v241_v5  ;;  %p289_p0 = scmp.ne.s32.totalorder %s168_s27, %s288_s0  ;;  %p294_p2 = scmp.lt.s32.totalorder %s288_s0, %s288_s0 }
   0xe   :  { %246 = vmatprep.subr.bf16.mxu0 %v245_v10  ;;  %271 = vmatprep.subr.bf16.mxu1 %v245_v10 }
   0xf   :  { %p295_p3 = por %p294_p2, %p293_p1 }
  0x11   :  { %p296_p4 = pnand %p295_p3, %p289_p0 }
  0x15   :  { %248 = vmatpush3.bf16.xpose.msra.mxu0 %v245_v10  ;;  %279 = vmatpush3.bf16.xpose.msra.mxu1 %v245_v10 }
  0x16   :  { %250 = vmatprep.subr.bf16.mxu0 %v249_v13  ;;  %272 = vmatprep.subr.bf16.mxu1 %v249_v13 }
  0x1d   :  { %252 = vmatpush3.bf16.xpose.msra.mxu0 %v249_v13  ;;  %280 = vmatpush3.bf16.xpose.msra.mxu1 %v249_v13 }
  0x1e   :  { %254 = vmatprep.subr.bf16.mxu0 %v253_v16  ;;  %273 = vmatprep.subr.bf16.mxu1 %v253_v16 }
  0x25   :  { %256 = vmatpush3.bf16.xpose.msra.mxu0 %v253_v16  ;;  %281 = vmatpush3.bf16.xpose.msra.mxu1 %v253_v16 }
  0x26   :  { %258 = vmatprep.subr.bf16.mxu0 %v257_v19  ;;  %274 = vmatprep.subr.bf16.mxu1 %v257_v19 }
  0x2d   :  { %260 = vmatpush3.bf16.xpose.msra.mxu0 %v257_v19  ;;  %282 = vmatpush3.bf16.xpose.msra.mxu1 %v257_v19 }
  0x2e   :  { %262 = vmatprep.subr.bf16.mxu0 %v261_v22  ;;  %275 = vmatprep.subr.bf16.mxu1 %v261_v22 }
  0x35   :  { %264 = vmatpush3.bf16.xpose.msra.mxu0 %v261_v22  ;;  %283 = vmatpush3.bf16.xpose.msra.mxu1 %v261_v22 }
  0x36   :  { %266 = vmatprep.subr.bf16.mxu0 %v265_v25  ;;  %276 = vmatprep.subr.bf16.mxu1 %v265_v25 }
  0x3d   :  { %268 = vmatpush3.bf16.xpose.msra.mxu0 %v265_v25  ;;  %284 = vmatpush3.bf16.xpose.msra.mxu1 %v265_v25 }
  0x44   :  { %232 = vmatmul.mubr.f32.vlgmr.msra.gmra.mrb[0].mxu0 %v28_v26  ;;  %235 = vmatmul.mubr.f32.vlgmr.msra.gmra.mrb[0].mxu1 %v30_v27 }
 0x117   :  { %v233_v29 = vpop.f32.mrb[0].mxu0  ;;  %v236_v30 = vpop.f32.mrb[0].mxu1 }
 0x118   :  { %v155_v31 = vadd.f32 %v233_v29, %v178_v28  ;;  %v157_v32 = vadd.f32 %v236_v30, %v178_v28  ;;  %v113_v33 = vpop.f32.mrb[1].mxu0  ;;  %v123_v34 = vpop.f32.mrb[1].mxu1 }
 0x119   :  { %v154_v35 = vadd.f32 %v178_v28, %v113_v33  ;;  %v156_v36 = vadd.f32 %v178_v28, %v123_v34 }
 0x11a   :  { %159 = vst [vmem:[#allocation3 + $0x8] sm:$0xff] %v155_v31  ;;  %161 = vst [vmem:[#allocation3 + $0x18] sm:$0xff] %v157_v32 }
 0x11b   :  { %158 = vst [vmem:[#allocation3] sm:$0xff] %v154_v35  ;;  %160 = vst [vmem:[#allocation3 + $0x10] sm:$0xff] %v156_v36 }
 0x11c   :  { %299 = shalt.err (!%p296_p4)
}
 0x11d   :  { %s300_s29 = scalar_lea.hbm %s413_s3, 512 }
 0x11e   :  { %p301_p5 = scmp.ne.s32.totalorder %s413_s3, %s300_s29  ;;  %p304_p6 = scmp.lt.u32.totalorder %s300_s29, %s413_s3 }
 0x120   :  { %p306_p7 = pnand %p304_p6, %p301_p5 }
 0x122   :  { %309 = shalt.err (!%p306_p7)
}
 0x123   :  { %s313_s7 = smov 128   ;;  %s314_s8 = smov 8  }
 0x124   :  { %173 = dma.vmem_to_hbm [thread:$0]  %s168_s27, 512, %s413_s3, [#allocation4], %s313_s7, %s313_s7, %s314_s8  }
 0x125   :  { %310 = dma.done.wait [#allocation4], 512  }
 0x126   :  { %311 = vsyncadd [#allocation4], 4294966784 }
 0x127   :  { %177 = vsyncpa [#allocation4], 1 }

</bundles_post_ra>
